<compile_context>
chip_gen: v6e
topology: v6e:2x2x1
jax: 0.10.0
libtpu: 0.0.40
codegen_flags: <defaults>
</compile_context>

<pallas_src>
import functools

import jax
import jax.numpy as jnp
from jax.experimental import pallas as pl
from jax.experimental.pallas import tpu as pltpu

_TM = 512  # rows per batch tile (double-buffered by the Pallas pipeline)


def _row_tile(n: int) -> int:
    return n if n <= _TM else _TM


# ----------------------------------------------------------------------------
# Kernels
# ----------------------------------------------------------------------------
def _fused_kernel(h1_ref, h2_ref, w1_ref, w2_ref, b_ref, o_ref):
    # Block-diagonal weights: each view writes its own column range of the
    # single lane-dense (tm, o1+o2) output tile. Bias already folds the mean.
    acc = jnp.dot(h1_ref[...], w1_ref[...], preferred_element_type=jnp.float32)
    acc = acc + jnp.dot(h2_ref[...], w2_ref[...],
                        preferred_element_type=jnp.float32)
    o_ref[...] = (acc - b_ref[...]).astype(o_ref.dtype)


def _single_kernel(h_ref, w_ref, b_ref, o_ref):
    acc = jnp.dot(h_ref[...], w_ref[...], preferred_element_type=jnp.float32)
    o_ref[...] = (acc - b_ref[...]).astype(o_ref.dtype)


# ----------------------------------------------------------------------------
# Jitted wrappers (single dispatch each; all shapes static at trace time)
# ----------------------------------------------------------------------------
@functools.partial(jax.jit, static_argnames=("o1",))
def _fused_forward(H1, H2, W1p, W2p, bias, *, o1):
    n, d1 = H1.shape
    _, d2 = H2.shape
    o_total = W1p.shape[1]
    tm = _row_tile(n)
    out = pl.pallas_call(
        _fused_kernel,
        out_shape=jax.ShapeDtypeStruct((n, o_total), jnp.float32),
        grid=(pl.cdiv(n, tm),),
        in_specs=[
            pl.BlockSpec((tm, d1), lambda i: (i, 0)),
            pl.BlockSpec((tm, d2), lambda i: (i, 0)),
            pl.BlockSpec((d1, o_total), lambda i: (0, 0)),   # VMEM-resident
            pl.BlockSpec((d2, o_total), lambda i: (0, 0)),   # VMEM-resident
            pl.BlockSpec((1, o_total), lambda i: (0, 0)),    # folded-mean bias
        ],
        out_specs=pl.BlockSpec((tm, o_total), lambda i: (i, 0)),
        compiler_params=pltpu.CompilerParams(
            dimension_semantics=("parallel",)),
    )(H1, H2, W1p, W2p, bias)
    return out[:, :o1], out[:, o1:]


@jax.jit
def _single_forward(H, W, bias):
    n, d = H.shape
    o = W.shape[1]
    tm = _row_tile(n)
    return pl.pallas_call(
        _single_kernel,
        out_shape=jax.ShapeDtypeStruct((n, o), jnp.float32),
        grid=(pl.cdiv(n, tm),),
        in_specs=[
            pl.BlockSpec((tm, d), lambda i: (i, 0)),
            pl.BlockSpec((d, o), lambda i: (0, 0)),
            pl.BlockSpec((1, o), lambda i: (0, 0)),
        ],
        out_specs=pl.BlockSpec((tm, o), lambda i: (i, 0)),
        compiler_params=pltpu.CompilerParams(
            dimension_semantics=("parallel",)),
    )(H, W, bias)


# ----------------------------------------------------------------------------
# Thin class mirroring the PyTorch module's interface.
# ----------------------------------------------------------------------------
class LinearCCATransformPallas:
    """weight: (W0, W1) with W_i (d_i, o_i); matrix_mean: (m0, m1) with m_i (d_i,)."""

    def __init__(self, weight, matrix_mean):
        w0 = jnp.asarray(weight[0], jnp.float32)
        w1 = jnp.asarray(weight[1], jnp.float32)
        m0 = jnp.asarray(matrix_mean[0], jnp.float32).reshape(-1)
        m1 = jnp.asarray(matrix_mean[1], jnp.float32).reshape(-1)
        d1, o1 = w0.shape
        d2, o2 = w1.shape
        self.o1, self.o2 = o1, o2
        self.w = (w0, w1)
        # Fold the mean into a bias: (H - m) @ W == H @ W - (m @ W).
        b0 = (m0 @ w0).reshape(1, o1)
        b1 = (m1 @ w1).reshape(1, o2)
        self.b = (b0, b1)
        # Block-diagonal packing for the fused two-view path: each view's
        # weight is zero-padded to the full (d_i, o1+o2) column range so both
        # dots accumulate into one lane-dense output tile.
        self.w0_pad = jnp.concatenate(
            [w0, jnp.zeros((d1, o2), jnp.float32)], axis=1)
        self.w1_pad = jnp.concatenate(
            [jnp.zeros((d2, o1), jnp.float32), w1], axis=1)
        self.b_fused = jnp.concatenate([b0, b1], axis=1)

    def forward(self, H1, H2):
        # No force-upcast: bf16 inputs go straight to the MXU (f32 accumulate).
        if H1.shape[0] == H2.shape[0]:
            return _fused_forward(H1, H2,
                                  self.w0_pad.astype(H1.dtype),
                                  self.w1_pad.astype(H2.dtype),
                                  self.b_fused, o1=self.o1)
        # Fallback when the two views have different batch sizes.
        out1 = _single_forward(H1, self.w[0].astype(H1.dtype), self.b[0])
        out2 = _single_forward(H2, self.w[1].astype(H2.dtype), self.b[1])
        return out1, out2


# ----------------------------------------------------------------------------
if __name__ == "__main__":
    key = jax.random.PRNGKey(0)

    batch = 8
    d1, d2 = 16, 20       # per-view feature dims (DCCA tower outputs)
    outdim = 8            # CCA projection dim

    key, k1, k2, kw0, kw1, km0, km1, k3 = jax.random.split(key, 8)
    H1 = jax.random.normal(k1, (batch, d1), jnp.float32)
    H2 = jax.random.normal(k2, (batch, d2), jnp.float32)
    W0 = 0.1 * jax.random.normal(kw0, (d1, outdim), jnp.float32)
    W1 = 0.1 * jax.random.normal(kw1, (d2, outdim), jnp.float32)
    m0 = jax.random.normal(km0, (d1,), jnp.float32)
    m1 = jax.random.normal(km1, (d2,), jnp.float32)

    model = LinearCCATransformPallas(weight=(W0, W1), matrix_mean=(m0, m1))

    # Pure-JAX reference (same math as the torch module).
    ref1 = (H1 - m0.reshape(1, -1)) @ W0
    ref2 = (H2 - m1.reshape(1, -1)) @ W1

    # --- fused two-view path (n1 == n2) ------------------------------------
    out1, out2 = model.forward(H1, H2)
    jax.block_until_ready((out1, out2))
    assert out1.shape == (batch, outdim)
    assert out2.shape == (batch, outdim)
    assert jnp.allclose(out1, ref1, atol=2e-5, rtol=1e-5)
    assert jnp.allclose(out2, ref2, atol=2e-5, rtol=1e-5)

    # --- fallback per-view path (n1 != n2) ----------------------------------
    H2b = jax.random.normal(k3, (batch + 4, d2), jnp.float32)
    f1, f2 = model.forward(H1, H2b)
    jax.block_until_ready((f1, f2))
    ref2b = (H2b - m1.reshape(1, -1)) @ W1
    assert f1.shape == (batch, outdim)
    assert f2.shape == (batch + 4, outdim)
    assert jnp.allclose(f1, ref1, atol=2e-5, rtol=1e-5)
    assert jnp.allclose(f2, ref2b, atol=2e-5, rtol=1e-5)

    print("KERNEL_OK")
</pallas_src>

<mosaic_0001>
module attributes {stable_mosaic.version = 11 : i64} {
  func.func @_fused_kernel(%arg0: i32, %arg1: memref<8x16xf32, #tpu.memory_space<vmem>>, %arg2: memref<8x20xf32, #tpu.memory_space<vmem>>, %arg3: memref<16x16xf32, #tpu.memory_space<vmem>>, %arg4: memref<20x16xf32, #tpu.memory_space<vmem>>, %arg5: memref<1x16xf32, #tpu.memory_space<vmem>>, %arg6: memref<8x16xf32, #tpu.memory_space<vmem>>) attributes {dimension_semantics = [#tpu.dimension_semantics<parallel>], iteration_bounds = array<i64: 1>, scalar_prefetch = 0 : i64, scratch_operands = 0 : i64, tpu.core_type = #tpu.core_type<tc>, window_params = [{transform_indices = @transform_0, window_bounds = array<i64: 8, 16>}, {transform_indices = @transform_1, window_bounds = array<i64: 8, 20>}, {pipeline_mode = #tpu.pipeline_mode<synchronous>, transform_indices = @transform_2, window_bounds = array<i64: 16, 16>}, {pipeline_mode = #tpu.pipeline_mode<synchronous>, transform_indices = @transform_3, window_bounds = array<i64: 20, 16>}, {pipeline_mode = #tpu.pipeline_mode<synchronous>, transform_indices = @transform_4, window_bounds = array<i64: 1, 16>}, {transform_indices = @transform_5, window_bounds = array<i64: 8, 16>}]} {
    %c0 = arith.constant 0 : index
    %c0_0 = arith.constant 0 : index
    %0 = vector.load %arg1[%c0, %c0_0] : memref<8x16xf32, #tpu.memory_space<vmem>>, vector<8x16xf32>
    %c0_1 = arith.constant 0 : index
    %c0_2 = arith.constant 0 : index
    %1 = vector.load %arg3[%c0_1, %c0_2] : memref<16x16xf32, #tpu.memory_space<vmem>>, vector<16x16xf32>
    %cst = arith.constant dense<0.000000e+00> : vector<8x16xf32>
    %2 = tpu.matmul %0, %1, %cst {dimension_numbers = #tpu.dot_dimension_numbers<[1], [0], [0], [1], [0, 0, 1, 1], [], []>} : vector<8x16xf32>, vector<16x16xf32>, vector<8x16xf32> -> vector<8x16xf32>
    %c0_3 = arith.constant 0 : index
    %c0_4 = arith.constant 0 : index
    %3 = vector.load %arg2[%c0_3, %c0_4] : memref<8x20xf32, #tpu.memory_space<vmem>>, vector<8x20xf32>
    %c0_5 = arith.constant 0 : index
    %c0_6 = arith.constant 0 : index
    %4 = vector.load %arg4[%c0_5, %c0_6] : memref<20x16xf32, #tpu.memory_space<vmem>>, vector<20x16xf32>
    %cst_7 = arith.constant dense<0.000000e+00> : vector<8x16xf32>
    %5 = tpu.matmul %3, %4, %cst_7 {dimension_numbers = #tpu.dot_dimension_numbers<[1], [0], [0], [1], [0, 0, 1, 1], [], []>} : vector<8x20xf32>, vector<20x16xf32>, vector<8x16xf32> -> vector<8x16xf32>
    %6 = arith.addf %2, %5 : vector<8x16xf32>
    %c0_8 = arith.constant 0 : index
    %c0_9 = arith.constant 0 : index
    %7 = vector.load %arg5[%c0_8, %c0_9] : memref<1x16xf32, #tpu.memory_space<vmem>>, vector<1x16xf32>
    %8 = vector.broadcast %7 : vector<1x16xf32> to vector<8x16xf32>
    %9 = arith.subf %6, %8 : vector<8x16xf32>
    %c0_10 = arith.constant 0 : index
    %c0_11 = arith.constant 0 : index
    %10 = vector.load %arg6[%c0_10, %c0_11] : memref<8x16xf32, #tpu.memory_space<vmem>>, vector<8x16xf32>
    tpu.vector_store %arg6[%c0_10, %c0_11], %9 {strides = array<i32>} : memref<8x16xf32, #tpu.memory_space<vmem>>, vector<8x16xf32>,
    return
  }
  func.func @transform_0(%arg0: i32) -> (i32, i32) {
    %c0_i32 = arith.constant 0 : i32
    %c0_i32_0 = arith.constant 0 : i32
    return %arg0, %c0_i32 : i32, i32
  }
  func.func @transform_1(%arg0: i32) -> (i32, i32) {
    %c0_i32 = arith.constant 0 : i32
    %c0_i32_0 = arith.constant 0 : i32
    return %arg0, %c0_i32 : i32, i32
  }
  func.func @transform_2(%arg0: i32) -> (i32, i32) {
    %c0_i32 = arith.constant 0 : i32
    %c0_i32_0 = arith.constant 0 : i32
    %c0_i32_1 = arith.constant 0 : i32
    return %c0_i32, %c0_i32_0 : i32, i32
  }
  func.func @transform_3(%arg0: i32) -> (i32, i32) {
    %c0_i32 = arith.constant 0 : i32
    %c0_i32_0 = arith.constant 0 : i32
    %c0_i32_1 = arith.constant 0 : i32
    return %c0_i32, %c0_i32_0 : i32, i32
  }
  func.func @transform_4(%arg0: i32) -> (i32, i32) {
    %c0_i32 = arith.constant 0 : i32
    %c0_i32_0 = arith.constant 0 : i32
    %c0_i32_1 = arith.constant 0 : i32
    return %c0_i32, %c0_i32_0 : i32, i32
  }
  func.func @transform_5(%arg0: i32) -> (i32, i32) {
    %c0_i32 = arith.constant 0 : i32
    %c0_i32_0 = arith.constant 0 : i32
    return %arg0, %c0_i32 : i32, i32
  }
}

</mosaic_0001>

<bundles_post_ra>
// kernel: _fused_forward.1
= control target key start
LH: loop header
LB: loop body
LE: loop exit
PB: predicated region body
PF: predicated region fallthrough
CT: control target
= control target key end

     0   :  { %vm31_vm0 = vcmask 1043456   ;;  %v221_v0 = vmov 0.0   ;;  %vm105_vm1 = vcmask 130048   ;;  %vm222_vm2 = vmmov 0   ;;  %s282_s3 = inlined_call_operand.vmem [shape: f32[20,16], index: 3, kind: input, shape index: {}]   ;;  %s283_s2 = inlined_call_operand.vmem [shape: f32[16,16], index: 2, kind: input, shape index: {}]   ;;  %s284_s0 = inlined_call_operand.vmem [shape: f32[8,16], index: 0, kind: input, shape index: {}]   ;;  %s285_s1 = inlined_call_operand.vmem [shape: f32[8,20], index: 1, kind: input, shape index: {}]   ;;  %s286_s4 = inlined_call_operand.vmem [shape: f32[1,16], index: 4, kind: input, shape index: {}]   ;;  %s287_s5 = inlined_call_operand.vmem [shape: f32[8,16], index: 5, kind: output, shape index: {}]  }
   0x1   :  { %203 = vmatprep.subr.mxu0 %v221_v0  ;;  %212 = vmatprep.subr.mxu1 %v221_v0  ;;  %v26_v1 = vld [vmem:[%s282_s3 + $0x10] sm:$0xf]  ;;  %v22_v2 = vld [vmem:[%s283_s2 + $0x8] sm:$0xff]  ;;  %v21_v4 = vld [vmem:[%s283_s2] sm:$0xff]  ;;  %vm27_vm3 = vcmask 162816  }
   0x2   :  { %v25_v3 = vld [vmem:[%s282_s3 + $0x8] sm:$0xff]  ;;  %204 = vmatpush3.msk.msra.mxu0 %vm31_vm0, %v26_v1  ;;  %213 = vmatpush3.msra.mxu1 %v22_v2  ;;  %v20_v5 = vld [vmem:[%s284_s0] sm:$0xff] }
   0x3   :  { %205 = vmatprep.subr.mxu0 %v221_v0  ;;  %214 = vmatprep.subr.mxu1 %v221_v0  ;;  %v24_v6 = vld [vmem:[%s282_s3] sm:$0xff] }
   0x4   :  { %206 = vmatpush3.msra.mxu0 %v25_v3  ;;  %215 = vmatpush3.msra.mxu1 %v21_v4  ;;  %v23_v7 = vld [vmem:[%s285_s1] sm:$0xff] }
   0x5   :  { %216 = vmatprep.mubr.msk.f32.mxu1 %vm222_vm2, %v221_v0  ;;  %207 = vmatprep.subr.mxu0 %v221_v0  ;;  %v195_v10 = vld [vmem:[%s286_s4] ss:$0 sm:$0xff] }
   0x6   :  { %217 = vmatmul.mubr.msk.f32.vlgmr.msra.gmra.mxu1 %vm105_vm1, %v20_v5  ;;  %208 = vmatpush3.msra.mxu0 %v24_v6 }
   0x7   :  { %209 = vmatprep.mubr.msk.f32.mxu0 %vm222_vm2, %v221_v0 }
   0x8   :  { %210 = vmatmul.mubr.msk.f32.vlgmr.msra.gmra.mxu0 %vm27_vm3, %v23_v7 }
  0xc6   :  { %v175_v8 = vpop.f32.mrf.mxu1 }
  0xc8   :  { %v101_v9 = vpop.f32.mrf.mxu0  ;;  %v218_v11 = vpop.f32.mrf.mxu1 }
  0xc9   :  { %v176_v12 = vadd.f32 %v175_v8, %v101_v9 }
  0xca   :  { %v211_v13 = vpop.f32.mrf.mxu0 }
  0xcb   :  { %v186_v14 = vsub.f32 %v176_v12, %v195_v10 }
  0xcd   :  { %187 = vst.msk [vmem:[%s287_s5] sm:$0xff] %vm105_vm1, %v186_v14 }

</bundles_post_ra>
